<compile_context>
chip_gen: v7x
topology: tpu7x:2x2x1
jax: 0.10.0
libtpu: 0.0.40
codegen_flags: <defaults>
</compile_context>

<pallas_src>
import functools

import jax
import jax.numpy as jnp
from jax import lax
from jax.experimental import pallas as pl
from jax.experimental.pallas import tpu as pltpu

_LANE = 128
_DEFAULT_TILE_BYTES = 2 << 20   # per input block, per pipeline buffer
_NUM_CORE_SPLITS = 2            # leading "parallel" grid axis (v7x: 2 TCs)


def _cdiv(a, b):
    return -(-a // b)


def _sublane_multiple(dtype):
    # Native sublane packing: 8 for 4-byte, 16 for 2-byte, 32 for 1-byte dtypes.
    itemsize = jnp.dtype(dtype).itemsize
    return max(8, 32 // max(1, itemsize))


def _sq_err_partial_kernel(gt_ref, rec_ref, part_ref, *,
                           n_rows, tile_rows, steps_per_core, may_need_mask):
    c = pl.program_id(0)   # core-split index ("parallel")
    s = pl.program_id(1)   # streaming step within this core ("arbitrary")

    @pl.when(s == 0)
    def _():
        part_ref[...] = jnp.zeros_like(part_ref)

    def accumulate(mask_rows):
        d = rec_ref[...].astype(jnp.float32) - gt_ref[...].astype(jnp.float32)
        if mask_rows:
            # Zero rows past the true row count (partial tail / fully-OOB block).
            # where() before squaring: OOB garbage (even NaN) cannot leak.
            row0 = (c * steps_per_core + s) * tile_rows
            row = lax.broadcasted_iota(jnp.int32, d.shape, 0) + row0
            d = jnp.where(row < n_rows, d, jnp.float32(0.0))
        sq = d * d
        # Reduce tile_rows -> 8 sublanes with vreg-wise VPU adds only
        # (no cross-lane work); the resident output block is the accumulator.
        part_ref[...] += jnp.sum(
            sq.reshape(tile_rows // 8, 8, sq.shape[-1]), axis=0)

    if may_need_mask:
        # Fast unmasked path for full interior tiles; mask only when this
        # logical block overhangs the true row count.
        needs = (c * steps_per_core + s) * tile_rows + tile_rows > n_rows

        @pl.when(needs)
        def _():
            accumulate(True)

        @pl.when(jnp.logical_not(needs))
        def _():
            accumulate(False)
    else:
        accumulate(False)


def _lane_dense_sq_err_sum(gt2d, rec2d, *, tile_bytes, num_splits):
    """Sum of squared error over a lane-dense (rows, 128) slab via Pallas."""
    n_rows, n_cols = gt2d.shape
    it_gt = jnp.dtype(gt2d.dtype).itemsize
    it_rec = jnp.dtype(rec2d.dtype).itemsize
    mult = max(_sublane_multiple(gt2d.dtype), _sublane_multiple(rec2d.dtype))

    budget_rows = tile_bytes // (n_cols * max(it_gt, it_rec))
    budget_rows = max(mult, (budget_rows // mult) * mult)
    needed_rows = _cdiv(n_rows, mult) * mult
    tile_rows = int(min(budget_rows, needed_rows))

    total_blocks = _cdiv(n_rows, tile_rows)
    num_splits = int(max(1, min(num_splits, total_blocks)))
    steps_per_core = _cdiv(total_blocks, num_splits)
    may_need_mask = num_splits * steps_per_core * tile_rows > n_rows
    may_clamp = num_splits * steps_per_core > total_blocks

    def in_map(c, s):
        blk = c * steps_per_core + s
        if may_clamp:
            # Fully-OOB steps (uneven block split across cores) re-read the last
            # valid block; their contribution is masked to zero in the kernel.
            blk = jnp.minimum(blk, total_blocks - 1)
        return (blk, 0)

    in_spec = pl.BlockSpec((tile_rows, n_cols), in_map)
    out_spec = pl.BlockSpec((None, 8, n_cols), lambda c, s: (c, 0, 0))

    kernel = functools.partial(
        _sq_err_partial_kernel,
        n_rows=n_rows, tile_rows=tile_rows,
        steps_per_core=steps_per_core, may_need_mask=may_need_mask)

    in_bytes = n_rows * n_cols * (it_gt + it_rec)
    out_bytes = num_splits * 8 * n_cols * 4
    vmem_limit = (2 * tile_rows * n_cols * (it_gt + it_rec)   # 2 pipeline bufs / input
                  + 2 * 8 * n_cols * 4                        # output block bufs
                  + (2 << 20))                                # headroom
    vmem_limit = int(min(max(vmem_limit, 8 << 20), 64 << 20))

    # TODO(synk): on v7x, pltpu.CORE_PARALLEL on the leading axis may shard the
    # two slices across TensorCores more explicitly than "parallel".
    partials = pl.pallas_call(
        kernel,
        out_shape=jax.ShapeDtypeStruct((num_splits, 8, n_cols), jnp.float32),
        grid_spec=pltpu.PrefetchScalarGridSpec(
            num_scalar_prefetch=0,
            grid=(num_splits, steps_per_core),
            in_specs=[in_spec, in_spec],
            out_specs=out_spec),
        compiler_params=pltpu.CompilerParams(
            dimension_semantics=("parallel", "arbitrary"),
            vmem_limit_bytes=vmem_limit),
        cost_estimate=pl.CostEstimate(
            flops=int(3 * n_rows * n_cols), transcendentals=0,
            bytes_accessed=int(in_bytes + out_bytes)),
    )(gt2d, rec2d)
    return jnp.sum(partials)


def _sum_squared_error(gt, rec, *, tile_bytes, num_splits):
    n = gt.size
    gt_flat = gt.reshape(-1)
    rec_flat = rec.reshape(-1)
    main = (n // _LANE) * _LANE

    total = jnp.float32(0.0)
    if main > 0:
        if main == n:
            gt2d = gt_flat.reshape(main // _LANE, _LANE)
            rec2d = rec_flat.reshape(main // _LANE, _LANE)
        else:
            # Prefix slice keeps the kernel lane-dense; the <128-element
            # remainder is reduced below in plain JAX.
            gt2d = gt_flat[:main].reshape(main // _LANE, _LANE)
            rec2d = rec_flat[:main].reshape(main // _LANE, _LANE)
        total = _lane_dense_sq_err_sum(
            gt2d, rec2d, tile_bytes=tile_bytes, num_splits=num_splits)
    if main < n:
        dt = rec_flat[main:].astype(jnp.float32) - gt_flat[main:].astype(jnp.float32)
        total = total + jnp.sum(dt * dt)
    return total


def motion_vqvae_loss(motion_gt, motion_recon, commitment_loss, split="train",
                      commitment_loss_weight=1.0, motion_weight=1.0,
                      tile_bytes=_DEFAULT_TILE_BYTES, num_splits=_NUM_CORE_SPLITS):
    assert motion_gt.shape == motion_recon.shape
    sq_sum = _sum_squared_error(motion_gt, motion_recon,
                                tile_bytes=tile_bytes, num_splits=num_splits)
    mse = sq_sum / jnp.float32(motion_gt.size)

    comm = jnp.asarray(commitment_loss, dtype=jnp.float32)
    rec_loss = jnp.float32(motion_weight) * mse
    loss = rec_loss + jnp.float32(commitment_loss_weight) * comm

    log = {
        f"{split}/total_loss": jnp.mean(loss),
        f"{split}/commitment_loss": jnp.mean(comm),
        f"{split}/rec_loss": jnp.mean(rec_loss),
    }
    return loss, log


if __name__ == "__main__":
    key = jax.random.PRNGKey(0)
    k1, k2, k3 = jax.random.split(key, 3)

    # Case 1: small shape consistent with the module: motion as (batch, channels, seq).
    B, C, T = 2, 4, 16
    motion_gt = jax.random.normal(k1, (B, C, T), dtype=jnp.float32)
    motion_recon = motion_gt + 0.1 * jax.random.normal(k2, (B, C, T), dtype=jnp.float32)
    commitment_loss = jnp.abs(jax.random.normal(k3, (), dtype=jnp.float32)) * 0.01

    loss, log = motion_vqvae_loss(motion_gt, motion_recon, commitment_loss,
                                  split="train",
                                  commitment_loss_weight=0.5, motion_weight=2.0)
    jax.block_until_ready(loss)

    mse_ref = jnp.mean((motion_recon - motion_gt) ** 2)
    loss_ref = 2.0 * mse_ref + 0.5 * commitment_loss
    assert jnp.allclose(loss, loss_ref, rtol=1e-5, atol=1e-6), (loss, loss_ref)
    assert jnp.allclose(log["train/rec_loss"], 2.0 * mse_ref, rtol=1e-5, atol=1e-6)
    assert jnp.allclose(log["train/commitment_loss"], commitment_loss, rtol=1e-5, atol=1e-6)
    assert jnp.allclose(log["train/total_loss"], loss_ref, rtol=1e-5, atol=1e-6)

    # Case 2: ragged element count (not a multiple of 128): lane-dense prefix in
    # the kernel (2 blocks -> one per core-split), <128-elem tail in plain JAX.
    k4, k5 = jax.random.split(k3)
    gt2 = jax.random.normal(k4, (2, 41, 50), dtype=jnp.float32)
    rec2 = gt2 + 0.05 * jax.random.normal(k5, (2, 41, 50), dtype=jnp.float32)
    loss2, log2 = motion_vqvae_loss(gt2, rec2, commitment_loss, split="val",
                                    tile_bytes=8192)
    jax.block_until_ready(loss2)

    mse2_ref = jnp.mean((rec2 - gt2) ** 2)
    loss2_ref = 1.0 * mse2_ref + 1.0 * commitment_loss
    assert jnp.allclose(loss2, loss2_ref, rtol=1e-5, atol=1e-6), (loss2, loss2_ref)
    assert jnp.allclose(log2["val/rec_loss"], mse2_ref, rtol=1e-5, atol=1e-6)
    assert jnp.allclose(log2["val/commitment_loss"], commitment_loss, rtol=1e-5, atol=1e-6)

    # Case 3: odd block count across the 2-way split -> exercises the clamped
    # index_map + fully-OOB-masked step, plus the partial tail tile mask.
    k6, k7 = jax.random.split(k5)
    gt3 = jax.random.normal(k6, (2, 10, 128), dtype=jnp.float32)
    rec3 = gt3 + 0.05 * jax.random.normal(k7, (2, 10, 128), dtype=jnp.float32)
    loss3, _ = motion_vqvae_loss(gt3, rec3, commitment_loss, split="test",
                                 tile_bytes=4096)
    jax.block_until_ready(loss3)
    loss3_ref = jnp.mean((rec3 - gt3) ** 2) + commitment_loss
    assert jnp.allclose(loss3, loss3_ref, rtol=1e-5, atol=1e-6), (loss3, loss3_ref)

    # Case 4: bf16 inputs -> 16-row sublane rounding, diff computed in f32.
    k8, k9 = jax.random.split(k7)
    gt4 = jax.random.normal(k8, (2, 4, 48), dtype=jnp.bfloat16)
    rec4 = (gt4.astype(jnp.float32)
            + 0.1 * jax.random.normal(k9, (2, 4, 48), dtype=jnp.float32)).astype(jnp.bfloat16)
    loss4, _ = motion_vqvae_loss(gt4, rec4, commitment_loss, split="bf16")
    jax.block_until_ready(loss4)
    loss4_ref = jnp.mean((rec4.astype(jnp.float32) - gt4.astype(jnp.float32)) ** 2) + commitment_loss
    assert jnp.allclose(loss4, loss4_ref, rtol=1e-5, atol=1e-6), (loss4, loss4_ref)

    print("KERNEL_OK")
</pallas_src>

<mosaic_0001>
module attributes {stable_mosaic.version = 11 : i64} {
  func.func @_sq_err_partial_kernel(%arg0: i32, %arg1: i32, %arg2: memref<8x128xf32, #tpu.memory_space<vmem>>, %arg3: memref<8x128xf32, #tpu.memory_space<vmem>>, %arg4: memref<1x8x128xf32, #tpu.memory_space<vmem>>) attributes {dimension_semantics = [#tpu.dimension_semantics<parallel>, #tpu.dimension_semantics<arbitrary>], iteration_bounds = array<i64: 1, 1>, scalar_prefetch = 0 : i64, scratch_operands = 0 : i64, tpu.core_type = #tpu.core_type<tc>, window_params = [{transform_indices = @transform_0, window_bounds = array<i64: 8, 128>}, {transform_indices = @transform_1, window_bounds = array<i64: 8, 128>}, {transform_indices = @transform_2, window_bounds = array<i64: 1, 8, 128>}]} {
    %c0_i32 = arith.constant 0 : i32
    %0 = arith.cmpi eq, %arg1, %c0_i32 : i32
    %1 = arith.extui %0 : i1 to i32
    %c0_i32_0 = arith.constant 0 : i32
    %2 = arith.cmpi ne, %1, %c0_i32_0 : i32
    scf.if %2 {
      %cst = arith.constant 0.000000e+00 : f32
      %13 = vector.broadcast %cst : f32 to vector<8x128xf32>
      %c0 = arith.constant 0 : index
      %c0_5 = arith.constant 0 : index
      %c0_6 = arith.constant 0 : index
      %14 = vector.load %arg4[%c0, %c0_5, %c0_6] : memref<1x8x128xf32, #tpu.memory_space<vmem>>, vector<1x8x128xf32>
      %15 = vector.shape_cast %14 : vector<1x8x128xf32> to vector<8x128xf32>
      %16 = vector.shape_cast %13 : vector<8x128xf32> to vector<1x8x128xf32>
      tpu.vector_store %arg4[%c0, %c0_5, %c0_6], %16 {strides = array<i32>} : memref<1x8x128xf32, #tpu.memory_space<vmem>>, vector<1x8x128xf32>,
    } else {
    }
    %c1_i32 = arith.constant 1 : i32
    %3 = arith.muli %arg0, %c1_i32 : i32
    %4 = arith.addi %3, %arg1 : i32
    %c8_i32 = arith.constant 8 : i32
    %5 = arith.muli %4, %c8_i32 : i32
    %c8_i32_1 = arith.constant 8 : i32
    %6 = arith.addi %5, %c8_i32_1 : i32
    %c1_i32_2 = arith.constant 1 : i32
    %7 = arith.cmpi sgt, %6, %c1_i32_2 : i32
    %8 = arith.extui %7 : i1 to i32
    %c0_i32_3 = arith.constant 0 : i32
    %9 = arith.cmpi ne, %8, %c0_i32_3 : i32
    scf.if %9 {
      %c0 = arith.constant 0 : index
      %c0_5 = arith.constant 0 : index
      %13 = vector.load %arg3[%c0, %c0_5] : memref<8x128xf32, #tpu.memory_space<vmem>>, vector<8x128xf32>
      %c0_6 = arith.constant 0 : index
      %c0_7 = arith.constant 0 : index
      %14 = vector.load %arg2[%c0_6, %c0_7] : memref<8x128xf32, #tpu.memory_space<vmem>>, vector<8x128xf32>
      %15 = arith.subf %13, %14 : vector<8x128xf32>
      %c1_i32_8 = arith.constant 1 : i32
      %16 = arith.muli %arg0, %c1_i32_8 : i32
      %17 = arith.addi %16, %arg1 : i32
      %c8_i32_9 = arith.constant 8 : i32
      %18 = arith.muli %17, %c8_i32_9 : i32
      %19 = tpu.iota {dimensions = array<i32: 0>} : vector<8x128xi32>
      %20 = vector.broadcast %18 : i32 to vector<8x128xi32>
      %21 = arith.addi %19, %20 : vector<8x128xi32>
      %c1_i32_10 = arith.constant 1 : i32
      %22 = vector.broadcast %c1_i32_10 : i32 to vector<8x128xi32>
      %23 = arith.cmpi slt, %21, %22 : vector<8x128xi32>
      %cst = arith.constant 0.000000e+00 : f32
      %24 = vector.broadcast %cst : f32 to vector<8x128xf32>
      %25 = arith.select %23, %15, %24 : vector<8x128xi1>, vector<8x128xf32>
      %26 = arith.mulf %25, %25 : vector<8x128xf32>
      %c0_11 = arith.constant 0 : index
      %c0_12 = arith.constant 0 : index
      %c0_13 = arith.constant 0 : index
      %27 = vector.load %arg4[%c0_11, %c0_12, %c0_13] : memref<1x8x128xf32, #tpu.memory_space<vmem>>, vector<1x8x128xf32>
      %28 = vector.shape_cast %27 : vector<1x8x128xf32> to vector<8x128xf32>
      %29 = vector.shape_cast %26 : vector<8x128xf32> to vector<1x8x128xf32>
      %cst_14 = arith.constant dense<0.000000e+00> : vector<8x128xf32>
      %30 = vector.multi_reduction <add>, %29, %cst_14 [0] : vector<1x8x128xf32> to vector<8x128xf32>
      %31 = arith.addf %28, %30 : vector<8x128xf32>
      %c0_15 = arith.constant 0 : index
      %c0_16 = arith.constant 0 : index
      %c0_17 = arith.constant 0 : index
      %32 = vector.load %arg4[%c0_15, %c0_16, %c0_17] : memref<1x8x128xf32, #tpu.memory_space<vmem>>, vector<1x8x128xf32>
      %33 = vector.shape_cast %32 : vector<1x8x128xf32> to vector<8x128xf32>
      %34 = vector.shape_cast %31 : vector<8x128xf32> to vector<1x8x128xf32>
      tpu.vector_store %arg4[%c0_15, %c0_16, %c0_17], %34 {strides = array<i32>} : memref<1x8x128xf32, #tpu.memory_space<vmem>>, vector<1x8x128xf32>,
    } else {
    }
    %true = arith.constant true
    %10 = arith.xori %7, %true : i1
    %11 = arith.extui %10 : i1 to i32
    %c0_i32_4 = arith.constant 0 : i32
    %12 = arith.cmpi ne, %11, %c0_i32_4 : i32
    scf.if %12 {
      %c0 = arith.constant 0 : index
      %c0_5 = arith.constant 0 : index
      %13 = vector.load %arg3[%c0, %c0_5] : memref<8x128xf32, #tpu.memory_space<vmem>>, vector<8x128xf32>
      %c0_6 = arith.constant 0 : index
      %c0_7 = arith.constant 0 : index
      %14 = vector.load %arg2[%c0_6, %c0_7] : memref<8x128xf32, #tpu.memory_space<vmem>>, vector<8x128xf32>
      %15 = arith.subf %13, %14 : vector<8x128xf32>
      %16 = arith.mulf %15, %15 : vector<8x128xf32>
      %c0_8 = arith.constant 0 : index
      %c0_9 = arith.constant 0 : index
      %c0_10 = arith.constant 0 : index
      %17 = vector.load %arg4[%c0_8, %c0_9, %c0_10] : memref<1x8x128xf32, #tpu.memory_space<vmem>>, vector<1x8x128xf32>
      %18 = vector.shape_cast %17 : vector<1x8x128xf32> to vector<8x128xf32>
      %19 = vector.shape_cast %16 : vector<8x128xf32> to vector<1x8x128xf32>
      %cst = arith.constant dense<0.000000e+00> : vector<8x128xf32>
      %20 = vector.multi_reduction <add>, %19, %cst [0] : vector<1x8x128xf32> to vector<8x128xf32>
      %21 = arith.addf %18, %20 : vector<8x128xf32>
      %c0_11 = arith.constant 0 : index
      %c0_12 = arith.constant 0 : index
      %c0_13 = arith.constant 0 : index
      %22 = vector.load %arg4[%c0_11, %c0_12, %c0_13] : memref<1x8x128xf32, #tpu.memory_space<vmem>>, vector<1x8x128xf32>
      %23 = vector.shape_cast %22 : vector<1x8x128xf32> to vector<8x128xf32>
      %24 = vector.shape_cast %21 : vector<8x128xf32> to vector<1x8x128xf32>
      tpu.vector_store %arg4[%c0_11, %c0_12, %c0_13], %24 {strides = array<i32>} : memref<1x8x128xf32, #tpu.memory_space<vmem>>, vector<1x8x128xf32>,
    } else {
    }
    return
  }
  func.func @transform_0(%arg0: i32, %arg1: i32) -> (i32, i32) {
    %c1_i32 = arith.constant 1 : i32
    %0 = arith.muli %arg0, %c1_i32 : i32
    %1 = arith.addi %0, %arg1 : i32
    %c0_i32 = arith.constant 0 : i32
    %c0_i32_0 = arith.constant 0 : i32
    return %1, %c0_i32 : i32, i32
  }
  func.func @transform_1(%arg0: i32, %arg1: i32) -> (i32, i32) {
    %c1_i32 = arith.constant 1 : i32
    %0 = arith.muli %arg0, %c1_i32 : i32
    %1 = arith.addi %0, %arg1 : i32
    %c0_i32 = arith.constant 0 : i32
    %c0_i32_0 = arith.constant 0 : i32
    return %1, %c0_i32 : i32, i32
  }
  func.func @transform_2(%arg0: i32, %arg1: i32) -> (i32, i32, i32) {
    %c0_i32 = arith.constant 0 : i32
    %c0_i32_0 = arith.constant 0 : i32
    %c0_i32_1 = arith.constant 0 : i32
    return %arg0, %c0_i32, %c0_i32_0 : i32, i32, i32
  }
}

</mosaic_0001>

<bundles_post_ra>
// kernel: tpu_custom_call.1
= control target key start
LH: loop header
LB: loop body
LE: loop exit
PB: predicated region body
PF: predicated region fallthrough
CT: control target
= control target key end

     0   :  { %7 = vsyncpa [#allocation3], 0  ;;  %s221_s0 = inlined_call_operand.hbm [shape: f32[1,128], index: 0, kind: input, shape index: {}]   ;;  %s222_s1 = inlined_call_operand.vmem [shape: f32[1,128], index: 1, kind: input, shape index: {}]   ;;  %s223_s2 = inlined_call_operand.hbm [shape: f32[1,8,128], index: 2, kind: output, shape index: {}]  }
   0x1   :  { %8 = vsyncpa [#allocation4], 0 }
   0x2   :  { %17 = vsyncadd [#allocation3], 112  ;;  %s175_s9 = smov [#allocation2]   ;;  %s127_s13 = scalar_lea.hbm %s221_s0, 16 }
   0x3   :  { %s21_s10 = sshll.u32 %s175_s9, 4  ;;  %p128_p0 = scmp.ne.s32.totalorder %s221_s0, %s127_s13  ;;  %s22_s10 = int_to_ptr.vmem [resolvable:$true] %s21_s10 }
   0x4   :  { %p131_p1 = scmp.lt.u32.totalorder %s127_s13, %s221_s0 }
   0x6   :  { %p133_p2 = pnand %p131_p1, %p128_p0 }
   0x8   :  { %136 = shalt.err (!%p133_p2)
}
   0x9   :  { %s137_s18 = scalar_lea.vmem %s22_s10, 16  ;;  %s141_s19 = scalar_lea.vmem %s22_s10, 128 }
   0xa   :  { %p138_p3 = scmp.ne.s32.totalorder %s22_s10, %s137_s18  ;;  %p142_p4 = scmp.lt.s32.totalorder %s22_s10, %s22_s10 }
   0xb   :  { %p143_p5 = scmp.lt.s32.totalorder %s141_s19, %s137_s18 }
   0xd   :  { %p144_p6 = por %p143_p5, %p142_p4 }
   0xf   :  { %p145_p7 = pnand %p144_p6, %p138_p3 }
  0x11   :  { %148 = shalt.err (!%p145_p7)
}
  0x12   :  { %s176_s20 = smov 16   ;;  %s177_s21 = smov 1  }
  0x13   :  { %27 = dma.hbm_to_vmem [thread:$0]  %s221_s0, 16, %s22_s10, [#allocation3], %s176_s20, %s176_s20, %s177_s21  }
  0x14   :  { %171 = dma.done.wait [#allocation3], 128  }
  0x15   :  { %172 = vsyncadd [#allocation3], 4294967168  ;;  %v81_v0 = vlaneseq  ;;  %v78_v2 = vld [vmem:[%s222_s1] sm:$0xff]  ;;  %s178_s26 = smov [#allocation5]  }
  0x16   :  { %v79_v3 = vld [vmem:[#allocation2] sm:$0xff]  ;;  %s110_s27 = sshll.u32 %s178_s26, 4  ;;  %s111_s27 = int_to_ptr.vmem [resolvable:$true] %s110_s27 }
  0x17   :  { %v82_v1 = vshrl.u32 %v81_v0, 7  ;;  %v80_v4 = vsub.f32 %v78_v2, %v79_v3  ;;  %s149_s28 = scalar_lea.vmem %s111_s27, 128  ;;  %p154_p9 = scmp.lt.s32.totalorder %s111_s27, %s111_s27 }
  0x18   :  { %p150_p8 = scmp.ne.s32.totalorder %s111_s27, %s149_s28  ;;  %p155_p10 = scmp.lt.s32.totalorder %s149_s28, %s149_s28 }
  0x19   :  { %vm85_vm0 = vcmp.lt.s32.totalorder %v82_v1, 1 }
  0x1a   :  { %v86_v5 = vsel %vm85_vm0, %v80_v4, 0.0  ;;  %p156_p11 = por %p155_p10, %p154_p9 }
  0x1b   :  { %v87_v6 = vmul.f32 %v86_v5, %v86_v5 }
  0x1c   :  { %p157_p12 = pnand %p156_p11, %p150_p8 }
  0x1d   :  { %91 = vst [vmem:[#allocation5] sm:$0xff] %v87_v6 }
  0x1e   :  { %160 = shalt.err (!%p157_p12)
}
  0x1f   :  { %s161_s1 = scalar_lea.hbm %s223_s2, 128 }
  0x20   :  { %p162_p13 = scmp.ne.s32.totalorder %s223_s2, %s161_s1  ;;  %p165_p0 = scmp.lt.u32.totalorder %s161_s1, %s223_s2 }
  0x22   :  { %p167_p1 = pnand %p165_p0, %p162_p13 }
  0x24   :  { %170 = shalt.err (!%p167_p1)
}
  0x25   :  { %113 = dma.vmem_to_hbm [thread:$0]  %s111_s27, 128, %s223_s2, [#allocation4]  }
  0x26   :  { %173 = dma.done.wait [#allocation4], 128  }
  0x27   :  { %174 = vsyncadd [#allocation4], 4294967168 }
  0x28   :  { %117 = vsyncpa [#allocation3], 1 }
  0x29   :  { %118 = vsyncpa [#allocation4], 1 }

</bundles_post_ra>
